<compile_context>
chip_gen: v7x
topology: tpu7x:2x2x1
jax: 0.10.0
libtpu: 0.0.40
codegen_flags: <defaults>
</compile_context>

<pallas_src>
import functools

import jax
import jax.numpy as jnp
from jax.experimental import pallas as pl
from jax.experimental.pallas import tpu as pltpu

IN_WIDE_DIM = 28
IN_DEEP_DIM = 28
LATENT_DIM = 16
HIDDEN_DIM = 32

# Every matmul operand is zero-padded into a (PACK, PACK) slot so the whole VAE
# forward is four identical (B,PACK)@(PACK,PACK) MXU passes with no ragged edges.
# Per review: do NOT pad operands up to 128 lanes "for the MXU" -- lane density
# comes from co-packing 4 logical outputs into one 128-lane output slab.
PACK = max(IN_WIDE_DIM, IN_DEEP_DIM, HIDDEN_DIM, 2 * LATENT_DIM)
PACK = ((PACK + 7) // 8) * 8          # sublane-align; == 32 at default dims

# weight slab layout (8, PACK, PACK):  [deep: enc, muvar, dec1, dec2,
#                                       wide: enc, muvar, dec1, dec2]
_ENC, _MUVAR, _DEC1, _DEC2 = 0, 1, 2, 3


# --------------------------------------------------------------------------
# Kernel: one grid step == one batch tile; both sub-VAEs computed in the body.
#   inputs : xd (bt, IN_DEEP), xw (bt, IN_WIDE), ed/ew (bt, LATENT)
#   weights: (8, PACK, PACK)   biases: (8, 1, PACK)   (VMEM-resident)
#   output : (bt, 4*PACK) = [recon_d | muvar_d | recon_w | muvar_w]
# --------------------------------------------------------------------------
def _wide_deep_vae_kernel(xd_ref, xw_ref, ed_ref, ew_ref, w_ref, b_ref, out_ref,
                          *, matmul_dtype):
    bt = xd_ref.shape[0]
    lane = jax.lax.broadcasted_iota(jnp.int32, (bt, PACK), 1)
    in_latent = lane < LATENT_DIM

    def run_vae(x, eps, base, in_dim, col):
        # ---- encoder ----  (pad x to PACK lanes in-kernel; pad lanes hit zero
        # weight rows, so they are inert)
        xp = jnp.pad(x, ((0, 0), (0, PACK - in_dim))).astype(matmul_dtype)
        h = jnp.dot(xp, w_ref[base + _ENC],
                    preferred_element_type=jnp.float32) + b_ref[base + _ENC]
        h = jnp.maximum(h, 0.0)                                      # f32 (VPU)

        # ---- fused mu / log_var projection (single MXU pass) ----
        muvar = jnp.dot(h.astype(matmul_dtype), w_ref[base + _MUVAR],
                        preferred_element_type=jnp.float32) + b_ref[base + _MUVAR]
        # lanes [0:L] = mu, lanes [L:2L] = log_var

        # ---- reparameterize, concat-free ----
        # v_z = [ mu | eps * exp(0.5*log_var) ]  (PACK lanes).  The decoder-1
        # weight rows [0:L] and [L:2L] are both W_dec1 (duplicated at pack
        # time), so  v_z @ W_dec1_packed == (mu + eps*std) @ W_dec1.
        eps_hi = jnp.pad(eps, ((0, 0), (LATENT_DIM, PACK - 2 * LATENT_DIM)))
        v_z = jnp.where(in_latent, muvar, eps_hi * jnp.exp(0.5 * muvar))

        # ---- decoder ----
        d = jnp.dot(v_z.astype(matmul_dtype), w_ref[base + _DEC1],
                    preferred_element_type=jnp.float32) + b_ref[base + _DEC1]
        d = jnp.maximum(d, 0.0)
        recon = jnp.dot(d.astype(matmul_dtype), w_ref[base + _DEC2],
                        preferred_element_type=jnp.float32) + b_ref[base + _DEC2]

        # sliced stores into the 128-lane output slab (no concatenate)
        out_ref[:, col:col + PACK] = recon
        out_ref[:, col + PACK:col + 2 * PACK] = muvar

    run_vae(xd_ref[...], ed_ref[...], 0, IN_DEEP_DIM, 0)          # deep
    run_vae(xw_ref[...], ew_ref[...], 4, IN_WIDE_DIM, 2 * PACK)   # wide


# --------------------------------------------------------------------------
# Parameter init (PyTorch nn.Linear-style) and one-time packing
# --------------------------------------------------------------------------
def init_vae_params(key, in_dim, hidden_dim, latent_dim):
    """U(-1/sqrt(fan_in), 1/sqrt(fan_in)); weights stored (fan_in, fan_out)."""
    def linear(k, fan_in, fan_out):
        kw, kb = jax.random.split(k)
        bound = 1.0 / jnp.sqrt(float(fan_in))
        w = jax.random.uniform(kw, (fan_in, fan_out), jnp.float32, -bound, bound)
        b = jax.random.uniform(kb, (1, fan_out), jnp.float32, -bound, bound)
        return w, b

    keys = jax.random.split(key, 5)
    w_enc, b_enc = linear(keys[0], in_dim, hidden_dim)
    w_mu, b_mu = linear(keys[1], hidden_dim, latent_dim)
    w_var, b_var = linear(keys[2], hidden_dim, latent_dim)
    w_dec1, b_dec1 = linear(keys[3], latent_dim, hidden_dim)
    w_dec2, b_dec2 = linear(keys[4], hidden_dim, in_dim)
    return dict(w_enc=w_enc, b_enc=b_enc, w_mu=w_mu, b_mu=b_mu,
                w_var=w_var, b_var=b_var, w_dec1=w_dec1, b_dec1=b_dec1,
                w_dec2=w_dec2, b_dec2=b_dec2)


def _pack_vae_params(p, in_dim, matmul_dtype):
    """Pack 5 weight matrices -> (4, PACK, PACK), 5 biases -> (4, 1, PACK)."""
    w = jnp.zeros((4, PACK, PACK), jnp.float32)
    w = w.at[_ENC, :in_dim, :HIDDEN_DIM].set(p["w_enc"])
    w = w.at[_MUVAR, :HIDDEN_DIM, :LATENT_DIM].set(p["w_mu"])
    w = w.at[_MUVAR, :HIDDEN_DIM, LATENT_DIM:2 * LATENT_DIM].set(p["w_var"])
    # decoder-1 rows DUPLICATED: rows [0:L] and [L:2L] both hold W_dec1 so the
    # kernel's v_z = [mu | eps*std] trick yields (mu + eps*std) @ W_dec1.
    w = w.at[_DEC1, :LATENT_DIM, :HIDDEN_DIM].set(p["w_dec1"])
    w = w.at[_DEC1, LATENT_DIM:2 * LATENT_DIM, :HIDDEN_DIM].set(p["w_dec1"])
    w = w.at[_DEC2, :HIDDEN_DIM, :in_dim].set(p["w_dec2"])

    b = jnp.zeros((4, 1, PACK), jnp.float32)
    b = b.at[_ENC, 0, :HIDDEN_DIM].set(p["b_enc"][0])
    b = b.at[_MUVAR, 0, :LATENT_DIM].set(p["b_mu"][0])
    b = b.at[_MUVAR, 0, LATENT_DIM:2 * LATENT_DIM].set(p["b_var"][0])
    b = b.at[_DEC1, 0, :HIDDEN_DIM].set(p["b_dec1"][0])
    b = b.at[_DEC2, 0, :in_dim].set(p["b_dec2"][0])
    # weights may be bf16 (halves DMA bytes on v6e/v7x); biases stay f32
    return w.astype(matmul_dtype), b


def pack_wide_and_deep_params(deep_params, wide_params,
                              matmul_dtype=jnp.float32):
    """One-time packing of both sub-VAEs -> ((8,PACK,PACK), (8,1,PACK))."""
    wd, bd = _pack_vae_params(deep_params, IN_DEEP_DIM, matmul_dtype)
    ww, bw = _pack_vae_params(wide_params, IN_WIDE_DIM, matmul_dtype)
    return (jnp.concatenate([wd, ww], axis=0),
            jnp.concatenate([bd, bw], axis=0))


# --------------------------------------------------------------------------
# Forward wrapper (mirrors WideAndDeepVAE.forward)
# --------------------------------------------------------------------------
@functools.partial(jax.jit, static_argnames=("return_embedding", "batch_tile"))
def wide_and_deep_vae_forward(x, packed_params, eps_deep, eps_wide,
                              return_embedding=False, batch_tile=1024):
    in_wide, in_deep = x["in_wide"], x["in_deep"]
    w_packed, b_packed = packed_params
    B = in_deep.shape[0]
    assert in_wide.shape[0] == B and eps_deep.shape[0] == B and eps_wide.shape[0] == B
    # TODO(synk): pad/mask ragged batches; we require sublane-aligned B here.
    assert B % 8 == 0, "pad the batch to a multiple of 8 sublanes"
    bt = min(batch_tile, B)
    assert B % bt == 0, "batch_tile must divide B (pad B or pick another tile)"
    n_steps = B // bt
    matmul_dtype = w_packed.dtype   # f32, or bf16 for the reduced-DMA path

    # NOTE: per-step blocks here are tiny (<1 MB); if DMA issue latency shows
    # up in a trace, sweep pipeline_mode=pl.Buffered(3) on the x/eps specs.
    out = pl.pallas_call(
        functools.partial(_wide_deep_vae_kernel, matmul_dtype=matmul_dtype),
        out_shape=jax.ShapeDtypeStruct((B, 4 * PACK), jnp.float32),
        grid=(n_steps,),
        in_specs=[
            pl.BlockSpec((bt, IN_DEEP_DIM), lambda i: (i, 0)),
            pl.BlockSpec((bt, IN_WIDE_DIM), lambda i: (i, 0)),
            pl.BlockSpec((bt, LATENT_DIM), lambda i: (i, 0)),
            pl.BlockSpec((bt, LATENT_DIM), lambda i: (i, 0)),
            # weight / bias slabs: index_map ignores the batch index -> fetched
            # once, VMEM-resident across all batch steps.
            pl.BlockSpec((8, PACK, PACK), lambda i: (0, 0, 0)),
            pl.BlockSpec((8, 1, PACK), lambda i: (0, 0, 0)),
        ],
        out_specs=pl.BlockSpec((bt, 4 * PACK), lambda i: (i, 0)),
        compiler_params=pltpu.CompilerParams(
            # batch axis is embarrassingly parallel -> v7x's 2 TCs split it
            dimension_semantics=("parallel",),
            vmem_limit_bytes=32 * 1024 * 1024),
    )(in_deep, in_wide, eps_deep, eps_wide, w_packed, b_packed)

    deep_out = out[:, :IN_DEEP_DIM]
    deep_mu = out[:, PACK:PACK + LATENT_DIM]
    deep_log_var = out[:, PACK + LATENT_DIM:PACK + 2 * LATENT_DIM]
    wide_out = out[:, 2 * PACK:2 * PACK + IN_WIDE_DIM]
    wide_mu = out[:, 3 * PACK:3 * PACK + LATENT_DIM]
    wide_log_var = out[:, 3 * PACK + LATENT_DIM:3 * PACK + 2 * LATENT_DIM]

    item_embedding = jnp.concatenate([deep_mu, wide_mu], axis=-1)
    out_dict = {
        "d_out": deep_out, "d_input": in_deep, "d_mu": deep_mu, "d_log_var": deep_log_var,
        "w_out": wide_out, "w_input": in_wide, "w_mu": wide_mu, "w_log_var": wide_log_var,
    }
    if return_embedding:
        # Kept on-device (no forced host sync); callers needing numpy can
        # np.asarray() it after dispatch (PyTorch did .detach().cpu().numpy()).
        return out_dict, item_embedding
    return out_dict


# --------------------------------------------------------------------------
# Pure-JAX reference for correctness checking
# --------------------------------------------------------------------------
def _vae_ref(x_in, eps, p):
    hp = jax.lax.Precision.HIGHEST
    h = jnp.maximum(jnp.dot(x_in, p["w_enc"], precision=hp) + p["b_enc"], 0.0)
    mu = jnp.dot(h, p["w_mu"], precision=hp) + p["b_mu"]
    log_var = jnp.dot(h, p["w_var"], precision=hp) + p["b_var"]
    z = mu + eps * jnp.exp(0.5 * log_var)
    d = jnp.maximum(jnp.dot(z, p["w_dec1"], precision=hp) + p["b_dec1"], 0.0)
    recon = jnp.dot(d, p["w_dec2"], precision=hp) + p["b_dec2"]
    return recon, mu, log_var


if __name__ == "__main__":
    key = jax.random.PRNGKey(0)
    k_deep, k_wide, k_xw, k_xd, k_ed, k_ew = jax.random.split(key, 6)

    B = 16                      # small demo batch; batch_tile=8 -> 2 grid steps
    deep_params = init_vae_params(k_deep, IN_DEEP_DIM, HIDDEN_DIM, LATENT_DIM)
    wide_params = init_vae_params(k_wide, IN_WIDE_DIM, HIDDEN_DIM, LATENT_DIM)
    packed_f32 = pack_wide_and_deep_params(deep_params, wide_params)

    x = {
        "in_wide": jax.random.normal(k_xw, (B, IN_WIDE_DIM), jnp.float32),
        "in_deep": jax.random.normal(k_xd, (B, IN_DEEP_DIM), jnp.float32),
    }
    eps_deep = jax.random.normal(k_ed, (B, LATENT_DIM), jnp.float32)
    eps_wide = jax.random.normal(k_ew, (B, LATENT_DIM), jnp.float32)

    out, emb = wide_and_deep_vae_forward(x, packed_f32, eps_deep, eps_wide,
                                         return_embedding=True, batch_tile=8)
    jax.block_until_ready(out)

    # shape sanity
    assert out["d_out"].shape == (B, IN_DEEP_DIM)
    assert out["w_out"].shape == (B, IN_WIDE_DIM)
    assert out["d_mu"].shape == (B, LATENT_DIM)
    assert out["w_log_var"].shape == (B, LATENT_DIM)
    assert emb.shape == (B, 2 * LATENT_DIM)

    # numerical check against pure-JAX reference (f32 matmul-operand path)
    ref_d = _vae_ref(x["in_deep"], eps_deep, deep_params)
    ref_w = _vae_ref(x["in_wide"], eps_wide, wide_params)
    checks = [
        (out["d_out"], ref_d[0]), (out["d_mu"], ref_d[1]), (out["d_log_var"], ref_d[2]),
        (out["w_out"], ref_w[0]), (out["w_mu"], ref_w[1]), (out["w_log_var"], ref_w[2]),
    ]
    for got, want in checks:
        err = float(jnp.max(jnp.abs(got - want)))
        assert err < 1e-3, f"mismatch vs reference: max abs err = {err}"

    # bf16 matmul-operand path (v6e/v7x DMA-byte reduction); elementwise stays
    # f32 in-kernel.  Loose smoke check only -- bf16 operands carry ~1e-2 error.
    packed_bf16 = pack_wide_and_deep_params(deep_params, wide_params,
                                            matmul_dtype=jnp.bfloat16)
    out_bf16 = wide_and_deep_vae_forward(x, packed_bf16, eps_deep, eps_wide,
                                         batch_tile=8)
    jax.block_until_ready(out_bf16)
    for name in ("d_out", "d_mu", "d_log_var", "w_out", "w_mu", "w_log_var"):
        err = float(jnp.max(jnp.abs(out_bf16[name] - out[name])))
        assert err < 0.25, f"bf16 path diverged on {name}: max abs err = {err}"

    print("KERNEL_OK")
</pallas_src>

<mosaic_0001>
module attributes {stable_mosaic.version = 11 : i64} {
  func.func @_wide_deep_vae_kernel(%arg0: i32, %arg1: memref<8x28xf32, #tpu.memory_space<vmem>>, %arg2: memref<8x28xf32, #tpu.memory_space<vmem>>, %arg3: memref<8x16xf32, #tpu.memory_space<vmem>>, %arg4: memref<8x16xf32, #tpu.memory_space<vmem>>, %arg5: memref<8x32x32xf32, #tpu.memory_space<vmem>>, %arg6: memref<8x1x32xf32, #tpu.memory_space<vmem>>, %arg7: memref<8x128xf32, #tpu.memory_space<vmem>>) attributes {dimension_semantics = [#tpu.dimension_semantics<parallel>], iteration_bounds = array<i64: 2>, scalar_prefetch = 0 : i64, scratch_operands = 0 : i64, tpu.core_type = #tpu.core_type<tc>, window_params = [{transform_indices = @transform_0, window_bounds = array<i64: 8, 28>}, {transform_indices = @transform_1, window_bounds = array<i64: 8, 28>}, {transform_indices = @transform_2, window_bounds = array<i64: 8, 16>}, {transform_indices = @transform_3, window_bounds = array<i64: 8, 16>}, {pipeline_mode = #tpu.pipeline_mode<synchronous>, transform_indices = @transform_4, window_bounds = array<i64: 8, 32, 32>}, {pipeline_mode = #tpu.pipeline_mode<synchronous>, transform_indices = @transform_5, window_bounds = array<i64: 8, 1, 32>}, {transform_indices = @transform_6, window_bounds = array<i64: 8, 128>}]} {
    %0 = tpu.iota {dimensions = array<i32: 1>} : vector<8x32xi32>
    %c16_i32 = arith.constant 16 : i32
    %1 = vector.broadcast %c16_i32 : i32 to vector<8x32xi32>
    %2 = arith.cmpi slt, %0, %1 : vector<8x32xi32>
    %c0 = arith.constant 0 : index
    %c0_0 = arith.constant 0 : index
    %3 = vector.load %arg1[%c0, %c0_0] : memref<8x28xf32, #tpu.memory_space<vmem>>, vector<8x28xf32>
    %c0_1 = arith.constant 0 : index
    %c0_2 = arith.constant 0 : index
    %4 = vector.load %arg3[%c0_1, %c0_2] : memref<8x16xf32, #tpu.memory_space<vmem>>, vector<8x16xf32>
    %c0_i32 = arith.constant 0 : i32
    %5 = arith.sitofp %c0_i32 : i32 to f32
    %6 = vector.broadcast %5 : f32 to vector<8x4xf32>
    %7 = tpu.concatenate %3, %6 in 1 : vector<8x28xf32>, vector<8x4xf32> -> vector<8x32xf32>
    %c0_3 = arith.constant 0 : index
    %c0_4 = arith.constant 0 : index
    %c0_5 = arith.constant 0 : index
    %8 = vector.load %arg5[%c0_3, %c0_4, %c0_5] : memref<8x32x32xf32, #tpu.memory_space<vmem>>, vector<1x32x32xf32>
    %9 = vector.shape_cast %8 : vector<1x32x32xf32> to vector<32x32xf32>
    %cst = arith.constant dense<0.000000e+00> : vector<8x32xf32>
    %10 = tpu.matmul %7, %9, %cst {dimension_numbers = #tpu.dot_dimension_numbers<[1], [0], [0], [1], [0, 0, 1, 1], [], []>} : vector<8x32xf32>, vector<32x32xf32>, vector<8x32xf32> -> vector<8x32xf32>
    %c0_6 = arith.constant 0 : index
    %c0_7 = arith.constant 0 : index
    %c0_8 = arith.constant 0 : index
    %11 = vector.load %arg6[%c0_6, %c0_7, %c0_8] : memref<8x1x32xf32, #tpu.memory_space<vmem>>, vector<1x1x32xf32>
    %12 = vector.shape_cast %11 : vector<1x1x32xf32> to vector<1x32xf32>
    %13 = vector.broadcast %12 : vector<1x32xf32> to vector<8x32xf32>
    %14 = arith.addf %10, %13 : vector<8x32xf32>
    %cst_9 = arith.constant 0.000000e+00 : f32
    %15 = vector.broadcast %cst_9 : f32 to vector<8x32xf32>
    %16 = arith.maximumf %14, %15 : vector<8x32xf32>
    %c1 = arith.constant 1 : index
    %c0_10 = arith.constant 0 : index
    %c0_11 = arith.constant 0 : index
    %17 = vector.load %arg5[%c1, %c0_10, %c0_11] : memref<8x32x32xf32, #tpu.memory_space<vmem>>, vector<1x32x32xf32>
    %18 = vector.shape_cast %17 : vector<1x32x32xf32> to vector<32x32xf32>
    %cst_12 = arith.constant dense<0.000000e+00> : vector<8x32xf32>
    %19 = tpu.matmul %16, %18, %cst_12 {dimension_numbers = #tpu.dot_dimension_numbers<[1], [0], [0], [1], [0, 0, 1, 1], [], []>} : vector<8x32xf32>, vector<32x32xf32>, vector<8x32xf32> -> vector<8x32xf32>
    %c1_13 = arith.constant 1 : index
    %c0_14 = arith.constant 0 : index
    %c0_15 = arith.constant 0 : index
    %20 = vector.load %arg6[%c1_13, %c0_14, %c0_15] : memref<8x1x32xf32, #tpu.memory_space<vmem>>, vector<1x1x32xf32>
    %21 = vector.shape_cast %20 : vector<1x1x32xf32> to vector<1x32xf32>
    %22 = vector.broadcast %21 : vector<1x32xf32> to vector<8x32xf32>
    %23 = arith.addf %19, %22 : vector<8x32xf32>
    %c0_i32_16 = arith.constant 0 : i32
    %24 = arith.sitofp %c0_i32_16 : i32 to f32
    %25 = vector.broadcast %24 : f32 to vector<8x16xf32>
    %26 = tpu.concatenate %25, %4 in 1 : vector<8x16xf32>, vector<8x16xf32> -> vector<8x32xf32>
    %cst_17 = arith.constant 5.000000e-01 : f32
    %27 = vector.broadcast %cst_17 : f32 to vector<8x32xf32>
    %28 = arith.mulf %27, %23 : vector<8x32xf32>
    %29 = math.exp %28 : vector<8x32xf32>
    %30 = arith.mulf %26, %29 : vector<8x32xf32>
    %31 = arith.select %2, %23, %30 : vector<8x32xi1>, vector<8x32xf32>
    %c2 = arith.constant 2 : index
    %c0_18 = arith.constant 0 : index
    %c0_19 = arith.constant 0 : index
    %32 = vector.load %arg5[%c2, %c0_18, %c0_19] : memref<8x32x32xf32, #tpu.memory_space<vmem>>, vector<1x32x32xf32>
    %33 = vector.shape_cast %32 : vector<1x32x32xf32> to vector<32x32xf32>
    %cst_20 = arith.constant dense<0.000000e+00> : vector<8x32xf32>
    %34 = tpu.matmul %31, %33, %cst_20 {dimension_numbers = #tpu.dot_dimension_numbers<[1], [0], [0], [1], [0, 0, 1, 1], [], []>} : vector<8x32xf32>, vector<32x32xf32>, vector<8x32xf32> -> vector<8x32xf32>
    %c2_21 = arith.constant 2 : index
    %c0_22 = arith.constant 0 : index
    %c0_23 = arith.constant 0 : index
    %35 = vector.load %arg6[%c2_21, %c0_22, %c0_23] : memref<8x1x32xf32, #tpu.memory_space<vmem>>, vector<1x1x32xf32>
    %36 = vector.shape_cast %35 : vector<1x1x32xf32> to vector<1x32xf32>
    %37 = vector.broadcast %36 : vector<1x32xf32> to vector<8x32xf32>
    %38 = arith.addf %34, %37 : vector<8x32xf32>
    %cst_24 = arith.constant 0.000000e+00 : f32
    %39 = vector.broadcast %cst_24 : f32 to vector<8x32xf32>
    %40 = arith.maximumf %38, %39 : vector<8x32xf32>
    %c3 = arith.constant 3 : index
    %c0_25 = arith.constant 0 : index
    %c0_26 = arith.constant 0 : index
    %41 = vector.load %arg5[%c3, %c0_25, %c0_26] : memref<8x32x32xf32, #tpu.memory_space<vmem>>, vector<1x32x32xf32>
    %42 = vector.shape_cast %41 : vector<1x32x32xf32> to vector<32x32xf32>
    %cst_27 = arith.constant dense<0.000000e+00> : vector<8x32xf32>
    %43 = tpu.matmul %40, %42, %cst_27 {dimension_numbers = #tpu.dot_dimension_numbers<[1], [0], [0], [1], [0, 0, 1, 1], [], []>} : vector<8x32xf32>, vector<32x32xf32>, vector<8x32xf32> -> vector<8x32xf32>
    %c3_28 = arith.constant 3 : index
    %c0_29 = arith.constant 0 : index
    %c0_30 = arith.constant 0 : index
    %44 = vector.load %arg6[%c3_28, %c0_29, %c0_30] : memref<8x1x32xf32, #tpu.memory_space<vmem>>, vector<1x1x32xf32>
    %45 = vector.shape_cast %44 : vector<1x1x32xf32> to vector<1x32xf32>
    %46 = vector.broadcast %45 : vector<1x32xf32> to vector<8x32xf32>
    %47 = arith.addf %43, %46 : vector<8x32xf32>
    %c0_31 = arith.constant 0 : index
    %c0_32 = arith.constant 0 : index
    %48 = vector.load %arg7[%c0_31, %c0_32] : memref<8x128xf32, #tpu.memory_space<vmem>>, vector<8x32xf32>
    tpu.vector_store %arg7[%c0_31, %c0_32], %47 {strides = array<i32>} : memref<8x128xf32, #tpu.memory_space<vmem>>, vector<8x32xf32>,
    %c0_33 = arith.constant 0 : index
    %c32 = arith.constant 32 : index
    %49 = vector.load %arg7[%c0_33, %c32] : memref<8x128xf32, #tpu.memory_space<vmem>>, vector<8x32xf32>
    tpu.vector_store %arg7[%c0_33, %c32], %23 {strides = array<i32>} : memref<8x128xf32, #tpu.memory_space<vmem>>, vector<8x32xf32>,
    %c0_34 = arith.constant 0 : index
    %c0_35 = arith.constant 0 : index
    %50 = vector.load %arg2[%c0_34, %c0_35] : memref<8x28xf32, #tpu.memory_space<vmem>>, vector<8x28xf32>
    %c0_36 = arith.constant 0 : index
    %c0_37 = arith.constant 0 : index
    %51 = vector.load %arg4[%c0_36, %c0_37] : memref<8x16xf32, #tpu.memory_space<vmem>>, vector<8x16xf32>
    %c0_i32_38 = arith.constant 0 : i32
    %52 = arith.sitofp %c0_i32_38 : i32 to f32
    %53 = vector.broadcast %52 : f32 to vector<8x4xf32>
    %54 = tpu.concatenate %50, %53 in 1 : vector<8x28xf32>, vector<8x4xf32> -> vector<8x32xf32>
    %c4 = arith.constant 4 : index
    %c0_39 = arith.constant 0 : index
    %c0_40 = arith.constant 0 : index
    %55 = vector.load %arg5[%c4, %c0_39, %c0_40] : memref<8x32x32xf32, #tpu.memory_space<vmem>>, vector<1x32x32xf32>
    %56 = vector.shape_cast %55 : vector<1x32x32xf32> to vector<32x32xf32>
    %cst_41 = arith.constant dense<0.000000e+00> : vector<8x32xf32>
    %57 = tpu.matmul %54, %56, %cst_41 {dimension_numbers = #tpu.dot_dimension_numbers<[1], [0], [0], [1], [0, 0, 1, 1], [], []>} : vector<8x32xf32>, vector<32x32xf32>, vector<8x32xf32> -> vector<8x32xf32>
    %c4_42 = arith.constant 4 : index
    %c0_43 = arith.constant 0 : index
    %c0_44 = arith.constant 0 : index
    %58 = vector.load %arg6[%c4_42, %c0_43, %c0_44] : memref<8x1x32xf32, #tpu.memory_space<vmem>>, vector<1x1x32xf32>
    %59 = vector.shape_cast %58 : vector<1x1x32xf32> to vector<1x32xf32>
    %60 = vector.broadcast %59 : vector<1x32xf32> to vector<8x32xf32>
    %61 = arith.addf %57, %60 : vector<8x32xf32>
    %cst_45 = arith.constant 0.000000e+00 : f32
    %62 = vector.broadcast %cst_45 : f32 to vector<8x32xf32>
    %63 = arith.maximumf %61, %62 : vector<8x32xf32>
    %c5 = arith.constant 5 : index
    %c0_46 = arith.constant 0 : index
    %c0_47 = arith.constant 0 : index
    %64 = vector.load %arg5[%c5, %c0_46, %c0_47] : memref<8x32x32xf32, #tpu.memory_space<vmem>>, vector<1x32x32xf32>
    %65 = vector.shape_cast %64 : vector<1x32x32xf32> to vector<32x32xf32>
    %cst_48 = arith.constant dense<0.000000e+00> : vector<8x32xf32>
    %66 = tpu.matmul %63, %65, %cst_48 {dimension_numbers = #tpu.dot_dimension_numbers<[1], [0], [0], [1], [0, 0, 1, 1], [], []>} : vector<8x32xf32>, vector<32x32xf32>, vector<8x32xf32> -> vector<8x32xf32>
    %c5_49 = arith.constant 5 : index
    %c0_50 = arith.constant 0 : index
    %c0_51 = arith.constant 0 : index
    %67 = vector.load %arg6[%c5_49, %c0_50, %c0_51] : memref<8x1x32xf32, #tpu.memory_space<vmem>>, vector<1x1x32xf32>
    %68 = vector.shape_cast %67 : vector<1x1x32xf32> to vector<1x32xf32>
    %69 = vector.broadcast %68 : vector<1x32xf32> to vector<8x32xf32>
    %70 = arith.addf %66, %69 : vector<8x32xf32>
    %c0_i32_52 = arith.constant 0 : i32
    %71 = arith.sitofp %c0_i32_52 : i32 to f32
    %72 = vector.broadcast %71 : f32 to vector<8x16xf32>
    %73 = tpu.concatenate %72, %51 in 1 : vector<8x16xf32>, vector<8x16xf32> -> vector<8x32xf32>
    %cst_53 = arith.constant 5.000000e-01 : f32
    %74 = vector.broadcast %cst_53 : f32 to vector<8x32xf32>
    %75 = arith.mulf %74, %70 : vector<8x32xf32>
    %76 = math.exp %75 : vector<8x32xf32>
    %77 = arith.mulf %73, %76 : vector<8x32xf32>
    %78 = arith.select %2, %70, %77 : vector<8x32xi1>, vector<8x32xf32>
    %c6 = arith.constant 6 : index
    %c0_54 = arith.constant 0 : index
    %c0_55 = arith.constant 0 : index
    %79 = vector.load %arg5[%c6, %c0_54, %c0_55] : memref<8x32x32xf32, #tpu.memory_space<vmem>>, vector<1x32x32xf32>
    %80 = vector.shape_cast %79 : vector<1x32x32xf32> to vector<32x32xf32>
    %cst_56 = arith.constant dense<0.000000e+00> : vector<8x32xf32>
    %81 = tpu.matmul %78, %80, %cst_56 {dimension_numbers = #tpu.dot_dimension_numbers<[1], [0], [0], [1], [0, 0, 1, 1], [], []>} : vector<8x32xf32>, vector<32x32xf32>, vector<8x32xf32> -> vector<8x32xf32>
    %c6_57 = arith.constant 6 : index
    %c0_58 = arith.constant 0 : index
    %c0_59 = arith.constant 0 : index
    %82 = vector.load %arg6[%c6_57, %c0_58, %c0_59] : memref<8x1x32xf32, #tpu.memory_space<vmem>>, vector<1x1x32xf32>
    %83 = vector.shape_cast %82 : vector<1x1x32xf32> to vector<1x32xf32>
    %84 = vector.broadcast %83 : vector<1x32xf32> to vector<8x32xf32>
    %85 = arith.addf %81, %84 : vector<8x32xf32>
    %cst_60 = arith.constant 0.000000e+00 : f32
    %86 = vector.broadcast %cst_60 : f32 to vector<8x32xf32>
    %87 = arith.maximumf %85, %86 : vector<8x32xf32>
    %c7 = arith.constant 7 : index
    %c0_61 = arith.constant 0 : index
    %c0_62 = arith.constant 0 : index
    %88 = vector.load %arg5[%c7, %c0_61, %c0_62] : memref<8x32x32xf32, #tpu.memory_space<vmem>>, vector<1x32x32xf32>
    %89 = vector.shape_cast %88 : vector<1x32x32xf32> to vector<32x32xf32>
    %cst_63 = arith.constant dense<0.000000e+00> : vector<8x32xf32>
    %90 = tpu.matmul %87, %89, %cst_63 {dimension_numbers = #tpu.dot_dimension_numbers<[1], [0], [0], [1], [0, 0, 1, 1], [], []>} : vector<8x32xf32>, vector<32x32xf32>, vector<8x32xf32> -> vector<8x32xf32>
    %c7_64 = arith.constant 7 : index
    %c0_65 = arith.constant 0 : index
    %c0_66 = arith.constant 0 : index
    %91 = vector.load %arg6[%c7_64, %c0_65, %c0_66] : memref<8x1x32xf32, #tpu.memory_space<vmem>>, vector<1x1x32xf32>
    %92 = vector.shape_cast %91 : vector<1x1x32xf32> to vector<1x32xf32>
    %93 = vector.broadcast %92 : vector<1x32xf32> to vector<8x32xf32>
    %94 = arith.addf %90, %93 : vector<8x32xf32>
    %c0_67 = arith.constant 0 : index
    %c64 = arith.constant 64 : index
    %95 = vector.load %arg7[%c0_67, %c64] : memref<8x128xf32, #tpu.memory_space<vmem>>, vector<8x32xf32>
    tpu.vector_store %arg7[%c0_67, %c64], %94 {strides = array<i32>} : memref<8x128xf32, #tpu.memory_space<vmem>>, vector<8x32xf32>,
    %c0_68 = arith.constant 0 : index
    %c96 = arith.constant 96 : index
    %96 = vector.load %arg7[%c0_68, %c96] : memref<8x128xf32, #tpu.memory_space<vmem>>, vector<8x32xf32>
    tpu.vector_store %arg7[%c0_68, %c96], %70 {strides = array<i32>} : memref<8x128xf32, #tpu.memory_space<vmem>>, vector<8x32xf32>,
    return
  }
  func.func @transform_0(%arg0: i32) -> (i32, i32) {
    %c0_i32 = arith.constant 0 : i32
    %c0_i32_0 = arith.constant 0 : i32
    return %arg0, %c0_i32 : i32, i32
  }
  func.func @transform_1(%arg0: i32) -> (i32, i32) {
    %c0_i32 = arith.constant 0 : i32
    %c0_i32_0 = arith.constant 0 : i32
    return %arg0, %c0_i32 : i32, i32
  }
  func.func @transform_2(%arg0: i32) -> (i32, i32) {
    %c0_i32 = arith.constant 0 : i32
    %c0_i32_0 = arith.constant 0 : i32
    return %arg0, %c0_i32 : i32, i32
  }
  func.func @transform_3(%arg0: i32) -> (i32, i32) {
    %c0_i32 = arith.constant 0 : i32
    %c0_i32_0 = arith.constant 0 : i32
    return %arg0, %c0_i32 : i32, i32
  }
  func.func @transform_4(%arg0: i32) -> (i32, i32, i32) {
    %c0_i32 = arith.constant 0 : i32
    %c0_i32_0 = arith.constant 0 : i32
    %c0_i32_1 = arith.constant 0 : i32
    %c0_i32_2 = arith.constant 0 : i32
    return %c0_i32, %c0_i32_0, %c0_i32_1 : i32, i32, i32
  }
  func.func @transform_5(%arg0: i32) -> (i32, i32, i32) {
    %c0_i32 = arith.constant 0 : i32
    %c0_i32_0 = arith.constant 0 : i32
    %c0_i32_1 = arith.constant 0 : i32
    %c0_i32_2 = arith.constant 0 : i32
    return %c0_i32, %c0_i32_0, %c0_i32_1 : i32, i32, i32
  }
  func.func @transform_6(%arg0: i32) -> (i32, i32) {
    %c0_i32 = arith.constant 0 : i32
    %c0_i32_0 = arith.constant 0 : i32
    return %arg0, %c0_i32 : i32, i32
  }
}

</mosaic_0001>

<bundles_post_ra>
// kernel: wide_and_deep_vae_forward.1
= control target key start
LH: loop header
LB: loop body
LE: loop exit
PB: predicated region body
PF: predicated region fallthrough
CT: control target
= control target key end

     0   :  { %s2126_s0 = inlined_call_operand.hbm [shape: f32[16,28], index: 0, kind: input, shape index: {}]   ;;  %s2127_s1 = inlined_call_operand.vmem [shape: f32[16,28], index: 1, kind: input, shape index: {}]   ;;  %s2128_s2 = inlined_call_operand.hbm [shape: f32[16,16], index: 2, kind: input, shape index: {}]   ;;  %s2129_s3 = inlined_call_operand.hbm [shape: f32[16,16], index: 3, kind: input, shape index: {}]   ;;  %s2130_s4 = inlined_call_operand.hbm [shape: f32[8,32,32], index: 4, kind: input, shape index: {}]   ;;  %s2131_s5 = inlined_call_operand.hbm [shape: f32[8,1,32], index: 5, kind: input, shape index: {}]   ;;  %s2132_s6 = inlined_call_operand.vmem [shape: f32[16,128], index: 6, kind: output, shape index: {}]  }
   0x1   :  { %2144 = sst [smem:[#allocation13_spill]] %s2128_s2 }
   0x2   :  { %11 = vsyncpa [#allocation3], 0 }
   0x3   :  { %13 = vsyncpa [#allocation3 + $0x1], 0 }
   0x4   :  { %14 = vsyncpa [#allocation5], 0 }
   0x5   :  { %16 = vsyncpa [#allocation5 + $0x1], 0 }
   0x6   :  { %17 = vsyncpa [#allocation8], 0  ;;  %s1803_s21 = smov 0   ;;  %s1805_s22 = smov 0  }
   0x7   :  { %s1807_s23 = smov 0   ;;  %s1809_s24 = smov 0  }
   0x8 LB: > { %s1822_s25 = sadd.s32 4294967295, %s1750_s24   ;;  %p43_p0 = scmp.ne.s32.totalorder %s1742_s22, %s1738_s21  ;;  %s1750_s24 = sphi %s1809_s24, %s2165_s24   ;;  %s1746_s23 = sphi %s1807_s23, %s2164_s23   ;;  %s1742_s22 = sphi %s1805_s22, %s2163_s22   ;;  %s1738_s21 = sphi %s1803_s21, %s2162_s21  }
   0x9   : > { %p2133_p1 = scmp.eq.s32.totalorder %s1822_s25, 0  ;;  %p1265_p2 = scmp.ge.s32.totalorder %s1750_s24, 1 }
   0xa   : > { %p200_p3 = scmp.lt.s32.totalorder %s1750_s24, 3  ;;  %s1752_s28 = smov [#allocation7]  }
   0xb   : > { %p1830_p4 = por %p2133_p1, %p43_p0  ;;  %s212_s29 = sshll.u32 %s1752_s28, 4  ;;  %s213_s29 = int_to_ptr.vmem [resolvable:$true] %s212_s29 }
   0xc   : > { %p1834_p5 = pnand %p1265_p2, %p200_p3  ;;  %s1847_s7 = sadd.s32 1, %s1750_s24  }
   0xd   : > { %s2145_s26 = scalar_select %p1830_p4, 1, 0 }
   0xe   : > { %s2146_s27 = scalar_select %p1834_p5, 1, 0 }
   0xf   : > { %p1491_p6 = pneg %p1834_p5  ;;  %s30_s8 = sadd.s32 1, %s1746_s23 }
  0x10   : > { %s27_s9 = ssub.s32 %s1750_s24, %s1847_s7  ;;  %s1562_s12 = scalar_lea.hbm %s2130_s4, 4096 }
  0x11   : > { %p1842_p7 = pnand %p1491_p6, %p2133_p1  ;;  %p1563_p8 = scmp.ne.s32.totalorder %s2130_s4, %s1562_s12 }
  0x12   : > { %p1569_p12 = scmp.lt.u32.totalorder %s1562_s12, %s2130_s4 }
  0x13   : > { %s2147_s30 = scalar_select %p1842_p7, 1, 0 }
  0x14   : > { %p2136_p9 = pneg %p1842_p7 }
  0x16   : > { %p1565_p10 = pnand %p2136_p9, %p1563_p8 }
  0x18   : > { %p1566_p11 = pneg %p1565_p10 }
  0x1a   : > { %p1571_p13 = pnand %p1569_p12, %p1566_p11 }
  0x1c   : > { %1574 = shalt.err (!%p1571_p13)
}
  0x1d   : > { %s1575_s17 = scalar_lea.vmem %s213_s29, 4096  ;;  %p1583_p6 = scmp.lt.s32.totalorder %s213_s29, %s213_s29 }
  0x1e   : > { %p1576_p0 = scmp.ne.s32.totalorder %s213_s29, %s1575_s17  ;;  %p1584_p1 = scmp.lt.s32.totalorder %s1575_s17, %s1575_s17 }
  0x20   : > { %p1578_p2 = pnand %p1576_p0, %p2136_p9  ;;  %p1585_p4 = por %p1584_p1, %p1583_p6 }
  0x22   : > { %p1579_p3 = pneg %p1578_p2 }
  0x24   : > { %p1586_p5 = pnand %p1585_p4, %p1579_p3 }
  0x26   : > { %1589 = shalt.err (!%p1586_p5)
}
  0x27   : > { %s1753_s18 = smov 128   ;;  %s1754_s19 = smov 8  }
  0x28   : > { %1494 = dma.hbm_to_vmem [thread:$0]  (!%p1842_p7), %s2130_s4, 4096, %s213_s29, [#allocation8], %s1753_s18, %s1753_s18, %s1754_s19  }
  0x29   : > { %p28_p1 = scmp.eq.s32.totalorder %s27_s9, 0  ;;  %p37_p4 = scmp.ne.s32.totalorder %s1746_s23, %s1742_s22 }
  0x2a   : > { %p38_p5 = scmp.eq.s32.totalorder %s1750_s24, 0  ;;  %p1510_p8 = scmp.lt.s32.totalorder %s1750_s24, 2 }
  0x2b   : > { %s1879_s28 = scalar_select %p28_p1, %s1746_s23, %s30_s8  }
  0x2c   : > { %p39_p10 = por %p38_p5, %p37_p4  ;;  %s2139_s10 = sand.u32 1, %s1746_s23  }
  0x2d   : > { %s1884_s11 = sshll.u32 %s2139_s10, 3  ;;  %s1887_s12 = sshll.u32 %s1750_s24, 7 }
  0x2e   : > { %p1889_p11 = pnand %p1510_p8, %p39_p10  ;;  %s264_s29 = sand.u32 1, %s1750_s24  }
  0x2f   : > { %s2149_s2 = sld [smem:[#allocation13_spill]]  ;;  %s268_s15 = scalar_lea.vmem [#allocation4], %s1884_s11 }
  0x30   : > { %s2148_s13 = scalar_select %p1889_p11, 1, 0 }
  0x31   : > { %s275_s16 = sshll.u32 %s268_s15, 4  ;;  %s1755_s17 = smov [#allocation9]   ;;  %s1901_s16 = int_to_ptr.vmem [resolvable:$true] %s275_s16 }
  0x32   : > { %s1903_s18 = sshll.u32 %s1755_s17, 4  ;;  %s1905_s19 = scalar_lea.sflag [#allocation5], %s264_s29  ;;  %s226_s18 = int_to_ptr.vmem [resolvable:$true] %s1903_s18 }
  0x33   : > { %p1911_p13 = pneg %p1889_p11 }
  0x35   : > { %s1898_s8 = scalar_lea.hbm %s2149_s2, %s1887_s12  ;;  %s1595_s14 = scalar_lea.hbm %s2149_s2, 256 }
  0x36   : > { %s1590_s20 = scalar_lea.hbm %s1898_s8, 128  ;;  %p1596_p3 = scmp.lt.u32.totalorder %s1898_s8, %s2149_s2 }
  0x37   : > { %p1591_p12 = scmp.ne.s32.totalorder %s1898_s8, %s1590_s20  ;;  %p1597_p6 = scmp.lt.u32.totalorder %s1595_s14, %s1590_s20 }
  0x38   : > { %s2150_s24 = scalar_select %p1911_p13, 1, 0 }
  0x39   : > { %p1593_p0 = pnand %p1911_p13, %p1591_p12  ;;  %p1598_p1 = por %p1597_p6, %p1596_p3 }
  0x3a   : > { %p1599_p4 = scmp.lt.u32.totalorder %s1590_s20, %s1898_s8 }
  0x3b   : > { %p1594_p2 = pneg %p1593_p0 }
  0x3c   : > { %p1600_p5 = por %p1599_p4, %p1598_p1 }
  0x3e   : > { %p1601_p8 = pnand %p1600_p5, %p1594_p2 }
  0x40   : > { %1604 = shalt.err (!%p1601_p8)
}
  0x41   : > { %s1605_s29 = scalar_lea.vmem %s1901_s16, 128  ;;  %s1756_s21 = smov [#allocation4]  }
  0x42   : > { %p1606_p10 = scmp.ne.s32.totalorder %s1901_s16, %s1605_s29  ;;  %s1610_s9 = sshll.u32 %s1756_s21, 4  ;;  %s1611_s9 = int_to_ptr.vmem [resolvable:$false] %s1610_s9 }
  0x43   : > { %s1612_s15 = scalar_lea.vmem %s1611_s9, 256  ;;  %p1613_p9 = scmp.lt.s32.totalorder %s1901_s16, %s1611_s9 }
  0x44   : > { %p1608_p12 = pnand %p1606_p10, %p1911_p13  ;;  %p1614_p7 = scmp.lt.s32.totalorder %s1612_s15, %s1605_s29 }
  0x46   : > { %p1609_p0 = pneg %p1608_p12  ;;  %p1615_p3 = por %p1614_p7, %p1613_p9 }
  0x48   : > { %p1616_p6 = pnand %p1615_p3, %p1609_p0 }
  0x4a   : > { %1619 = shalt.err (!%p1616_p6)
}
  0x4b   : > { %1504 = dma.hbm_to_vmem [thread:$0]  (!%p1889_p11), %s1898_s8, 128, %s1901_s16, %s1905_s19  }
  0x4c   : > { %s1620_s17 = scalar_lea.hbm %s2131_s5, 128  ;;  %p2151_p7 = scmp.ne.s32.totalorder %s2147_s30, 0 }
  0x4d   : > { %p1621_p2 = scmp.ne.s32.totalorder %s2131_s5, %s1620_s17  ;;  %p1627_p5 = scmp.lt.u32.totalorder %s1620_s17, %s2131_s5 }
  0x4e   : > { %p2152_p9 = pneg %p2151_p7 }
  0x50   : > { %p1623_p1 = pnand %p1621_p2, %p2152_p9 }
  0x52   : > { %p1624_p4 = pneg %p1623_p1 }
  0x54   : > { %p1629_p8 = pnand %p1627_p5, %p1624_p4 }
  0x56   : > { %1632 = shalt.err (!%p1629_p8)
}
  0x57   : > { %s1633_s8 = scalar_lea.vmem %s226_s18, 128  ;;  %p2153_p12 = pmov %p2152_p9 }
  0x58   : > { %p1634_p10 = scmp.ne.s32.totalorder %s226_s18, %s1633_s8  ;;  %p1641_p6 = scmp.lt.s32.totalorder %s226_s18, %s226_s18 }
  0x59   : > { %p1642_p11 = scmp.lt.s32.totalorder %s1633_s8, %s1633_s8 }
  0x5a   : > { %p1636_p0 = pnand %p1634_p10, %p2153_p12 }
  0x5b   : > { %p1643_p13 = por %p1642_p11, %p1641_p6 }
  0x5c   : > { %p1637_p3 = pneg %p1636_p0 }
  0x5e   : > { %p1644_p2 = pnand %p1643_p13, %p1637_p3 }
  0x60   : > { %1647 = shalt.err (!%p1644_p2)
}
  0x61   : > { %s1757_s10 = smov 16   ;;  %s1758_s16 = smov 1  }
  0x62   : > { %1497 = dma.hbm_to_vmem [thread:$0]  (!%p2151_p7), %s2131_s5, 128, %s226_s18, [#allocation8], %s1757_s10, %s1757_s10, %s1758_s16  }
  0x63   : > { %s1960_s21 = scalar_lea.hbm %s2126_s0, %s1887_s12  ;;  %s243_s29 = scalar_lea.vmem [#allocation2], %s1884_s11 }
  0x64   : > { %s250_s9 = sshll.u32 %s243_s29, 4  ;;  %s1969_s30 = scalar_lea.hbm %s2129_s3, %s1887_s12  ;;  %s1963_s9 = int_to_ptr.vmem [resolvable:$true] %s250_s9 }
  0x65   : > { %s2154_s15 = sand.u32 1, %s1746_s23   ;;  %s1648_s10 = scalar_lea.hbm %s1960_s21, 128 }
  0x66   : > { %s240_s18 = scalar_lea.sflag [#allocation3], %s2154_s15  ;;  %p1649_p11 = scmp.ne.s32.totalorder %s1960_s21, %s1648_s10 }
  0x67   : > { %p2155_p13 = scmp.ne.s32.totalorder %s2150_s24, 0  ;;  %s1653_s14 = scalar_lea.hbm %s2126_s0, 256 }
  0x68   : > { %p1654_p1 = scmp.lt.u32.totalorder %s1960_s21, %s2126_s0  ;;  %p1655_p4 = scmp.lt.u32.totalorder %s1653_s14, %s1648_s10 }
  0x69   : > { %p1651_p7 = pnand %p1649_p11, %p2155_p13  ;;  %p1657_p8 = scmp.lt.u32.totalorder %s1648_s10, %s1960_s21 }
  0x6a   : > { %p1656_p5 = por %p1655_p4, %p1654_p1 }
  0x6b   : > { %p1652_p9 = pneg %p1651_p7 }
  0x6c   : > { %p1658_p10 = por %p1657_p8, %p1656_p5 }
  0x6e   : > { %p1659_p12 = pnand %p1658_p10, %p1652_p9 }
  0x70   : > { %1662 = shalt.err (!%p1659_p12)
}
  0x71   : > { %s1663_s2 = scalar_lea.vmem %s1963_s9, 128  ;;  %s1759_s12 = smov [#allocation2]  }
  0x72   : > { %p1664_p0 = scmp.ne.s32.totalorder %s1963_s9, %s1663_s2  ;;  %s1668_s8 = sshll.u32 %s1759_s12, 4  ;;  %s1669_s8 = int_to_ptr.vmem [resolvable:$false] %s1668_s8 }
  0x73   : > { %s1670_s15 = scalar_lea.vmem %s1669_s8, 256  ;;  %p1671_p2 = scmp.lt.s32.totalorder %s1963_s9, %s1669_s8 }
  0x74   : > { %p1666_p3 = pnand %p1664_p0, %p2155_p13  ;;  %p1672_p11 = scmp.lt.s32.totalorder %s1670_s15, %s1663_s2 }
  0x76   : > { %p1667_p6 = pneg %p1666_p3  ;;  %p1673_p7 = por %p1672_p11, %p1671_p2 }
  0x78   : > { %p1674_p1 = pnand %p1673_p7, %p1667_p6 }
  0x7a   : > { %1677 = shalt.err (!%p1674_p1)
}
  0x7b   : > { %p2156_p9 = scmp.ne.s32.totalorder %s2148_s13, 0  ;;  %s286_s10 = scalar_lea.vmem [#allocation6], %s1884_s11 }
  0x7c   : > { %s293_s16 = sshll.u32 %s286_s10, 4  ;;  %s1678_s20 = scalar_lea.hbm %s1969_s30, 128  ;;  %s294_s16 = int_to_ptr.vmem [resolvable:$true] %s293_s16 }
  0x7d   : > { %1501 = dma.hbm_to_vmem [thread:$0]  (!%p2156_p9), %s1960_s21, 128, %s1963_s9, %s240_s18  }
  0x7e   : > { %p1679_p4 = scmp.ne.s32.totalorder %s1969_s30, %s1678_s20  ;;  %s1683_s29 = scalar_lea.hbm %s2129_s3, 256 }
  0x7f   : > { %p1684_p10 = scmp.lt.u32.totalorder %s1969_s30, %s2129_s3  ;;  %p1685_p12 = scmp.lt.u32.totalorder %s1683_s29, %s1678_s20 }
  0x80   : > { %p1681_p5 = pnand %p1679_p4, %p2155_p13  ;;  %p1687_p3 = scmp.lt.u32.totalorder %s1678_s20, %s1969_s30 }
  0x81   : > { %p1686_p0 = por %p1685_p12, %p1684_p10 }
  0x82   : > { %p1682_p8 = pneg %p1681_p5 }
  0x83   : > { %p1688_p6 = por %p1687_p3, %p1686_p0 }
  0x85   : > { %p1689_p2 = pnand %p1688_p6, %p1682_p8 }
  0x87   : > { %1692 = shalt.err (!%p1689_p2)
}
  0x88   : > { %s1693_s11 = scalar_lea.vmem %s294_s16, 128  ;;  %s1760_s21 = smov [#allocation6]  }
  0x89   : > { %p1694_p11 = scmp.ne.s32.totalorder %s294_s16, %s1693_s11  ;;  %s1698_s9 = sshll.u32 %s1760_s21, 4  ;;  %s1699_s9 = int_to_ptr.vmem [resolvable:$false] %s1698_s9 }
  0x8a   : > { %s1700_s18 = scalar_lea.vmem %s1699_s9, 256  ;;  %p1701_p4 = scmp.lt.s32.totalorder %s294_s16, %s1699_s9 }
  0x8b   : > { %p1696_p7 = pnand %p1694_p11, %p2155_p13  ;;  %p1702_p5 = scmp.lt.s32.totalorder %s1700_s18, %s1693_s11 }
  0x8d   : > { %p1697_p1 = pneg %p1696_p7  ;;  %p1703_p9 = por %p1702_p5, %p1701_p4 }
  0x8f   : > { %p1704_p10 = pnand %p1703_p9, %p1697_p1 }
  0x91   : > { %1707 = shalt.err (!%p1704_p10)
}
  0x92   : > { %p2157_p12 = scmp.ne.s32.totalorder %s2148_s13, 0  ;;  %p2158_p8 = scmp.ne.s32.totalorder %s2146_s27, 0 }
  0x93   : > { %s304_s24 = sand.u32 (!%p2158_p8), 1, %s1742_s22   ;;  %p2159_p13 = scmp.ne.s32.totalorder (!%p2158_p8), %s2145_s26, 0 }
  0x94   : > { %1507 = dma.hbm_to_vmem [thread:$0]  (!%p2157_p12), %s1969_s30, 128, %s294_s16, %s1905_s19  }
  0x95   : > { %302 = sbr.rel (%p2158_p8) target bundleno = 1624 (0x658), region = 44  ;;  %s2016_s8 = sshll.u32 (!%p2158_p8), %s304_s24, 3 }
  0x96   : > { %s305_s15 = scalar_lea.sflag (!%p2158_p8), [#allocation3], %s304_s24  ;;  %s308_s10 = scalar_lea.vmem (!%p2158_p8), [#allocation2], %s2016_s8 }
  0x9c   : > { %1725 = dma.done.wait (%p2159_p13), %s305_s15, 128  }
  0x9d   : > { %1727 = vsyncadd (%p2159_p13), %s305_s15, 4294967168  ;;  %s313_s13 = sand.u32 1, %s1822_s25   ;;  %s317_s27 = scalar_lea.vmem [#allocation4], %s2016_s8 }
  0x9e   : > { %s314_s19 = scalar_lea.sflag [#allocation5], %s313_s13 }
  0x9f   : > { %1729 = dma.done.wait (%p2159_p13), %s314_s19, 256  }
  0xa0   : > { %1731 = vsyncadd (%p2159_p13), %s314_s19, 4294967040  ;;  %s326_s30 = scalar_lea.vmem [#allocation6], %s2016_s8  ;;  %p2160_p9 = scmp.eq.s32.totalorder %s1822_s25, 0 }
  0xa2   : > { %1733 = dma.done.wait (%p2160_p9), [#allocation8], 4224   ;;  %p2161_p0 = pmov %p2160_p9 }
  0xa3   : > { %v1761_v0 = vmov 0.0|0.0   ;;  %vm1762_vm0 = vmmov 0   ;;  %v1763_v1 = vmov 0.0   ;;  %v391_v2 = vld [vmem:[#allocation7] sm:$0xff]  ;;  %v392_v3 = vld [vmem:[#allocation7 + $0x8] sm:$0xff]  ;;  %v393_v4 = vld [vmem:[#allocation7 + $0x10] sm:$0xff]  ;;  %v384_v37 = vlaneseq }
  0xa4   : > { %1735 = vsyncadd (%p2161_p0), [#allocation8], 4294963072  ;;  %1429 = vmatprep.subr.bf16.mxu0 %v1761_v0  ;;  %1349 = vmatprep.mubr.msk.f32.mxu0 %vm1762_vm0, %v1763_v1  ;;  %v1430_v5 = vpack.c.bf16 %v392_v3, %v391_v2  ;;  %v394_v6 = vld [vmem:[#allocation7 + $0x18] sm:$0xff]  ;;  %v478_v7 = vld [vmem:[#allocation7 + $0x20] sm:$0xff]  ;;  %vm389_vm1 = vcmask 228352   ;;  %vm402_vm2 = vcmask 261120  }
  0xa5   : > { %1435 = vmatprep.subr.bf16.mxu1 %v1761_v0  ;;  %1360 = vmatprep.mubr.msk.f32.mxu1 %vm1762_vm0, %v1763_v1  ;;  %v479_v8 = vld [vmem:[#allocation7 + $0x28] sm:$0xff]  ;;  %v1433_v9 = vpack.c.bf16 %v394_v6, %v393_v4  ;;  %v387_v11 = vld [vmem:[%s308_s10] sm:$0xff]  ;;  %s1764_s26 = smov 16   ;;  %v1283_v17 = vld [vmem:[#allocation9] ss:$0 sm:$0xff]  ;;  %s1765_s16 = smov 32  }
  0xa6   : > { %1431 = vmatpush3.bf16.msra.mxu0 %v1430_v5  ;;  %v1436_v10 = vpack.c.bf16 %v479_v8, %v478_v7  ;;  %v390_v12 = vsel %vm389_vm1, %v387_v11, 0.0  ;;  %v480_v13 = vld [vmem:[#allocation7 + $0x30] sm:$0xff]  ;;  %v481_v14 = vld [vmem:[#allocation7 + $0x38] sm:$0xff]  ;;  %v388_v16 = vld [vmem:[%s317_s27] sm:$0xff]  ;;  %p376_p3 = scmp.lt.s32.totalorder %s1822_s25, 1  ;;  %vm567_vm3 = vcmask 130048  }
  0xa7   : > { %1432 = vmatprep.subr.bf16.mxu0 %v1761_v0  ;;  %v1439_v15 = vpack.c.bf16 %v481_v14, %v480_v13  ;;  %564 = vrot.lane.b32.xlu0 %v388_v16, %s1764_s26  ;;  %v575_v22 = vld [vmem:[#allocation7 + $0x40] sm:$0xff]  ;;  %v576_v23 = vld [vmem:[#allocation7 + $0x48] sm:$0xff]  ;;  %v577_v25 = vld [vmem:[#allocation7 + $0x50] sm:$0xff]  ;;  %v2061_v39 = vand.u32 127, %v384_v37  ;;  %vm752_vm5 = vcmask 523520   ;;  %s1767_s21 = smov 64  }
  0xa8   : > { %1437 = vmatpush3.bf16.msra.mxu1 %v1436_v10  ;;  %v1442_v24 = vpack.c.bf16 %v576_v23, %v575_v22  ;;  %v578_v26 = vld [vmem:[#allocation7 + $0x58] sm:$0xff]  ;;  %v662_v28 = vld [vmem:[#allocation7 + $0x60] sm:$0xff]  ;;  %v663_v29 = vld [vmem:[#allocation7 + $0x68] sm:$0xff]  ;;  %s2167_s25 = smov (!%p376_p3, %s1822_s25), 1  ;;  %vm1117_vm6 = vcmask 785920   ;;  %vm1123_vm7 = vcmask 1048320  }
  0xa9   : > { %1438 = vmatprep.subr.bf16.mxu1 %v1761_v0  ;;  %v1445_v27 = vpack.c.bf16 %v578_v26, %v577_v25  ;;  %v1448_v30 = vpack.c.bf16 %v663_v29, %v662_v28  ;;  %v1285_v31 = vld [vmem:[#allocation9 + $0x1] ss:$0 sm:$0xff]  ;;  %v759_v42 = vld [vmem:[#allocation7 + $0x88] sm:$0xff]  ;;  %s1281_s20 = sshll.u32 %s2167_s25, 3  ;;  %vm386_vm4 = vcmp.lt.s32.totalorder %v2061_v39, 16  ;;  %v760_v46 = vld [vmem:[#allocation7 + $0x90] sm:$0xff] }
  0xaa   : > { %1434 = vmatpush3.bf16.msra.mxu0 %v1433_v9  ;;  %v758_v41 = vld [vmem:[#allocation7 + $0x80] sm:$0xff]  ;;  %v761_v47 = vld [vmem:[#allocation7 + $0x98] sm:$0xff]  ;;  %s379_s29 = scalar_lea.vmem %s2127_s1, %s1281_s20  ;;  %v664_v52 = vld [vmem:[#allocation7 + $0x70] sm:$0xff]  ;;  %s2100_s11 = scalar_lea.vmem %s2132_s6, %s1281_s20 }
  0xab   : > { %1441 = vmatprep.subr.bf16.mxu0 %v1761_v0  ;;  %v1454_v45 = vpack.c.bf16 %v759_v42, %v758_v41  ;;  %v1457_v49 = vpack.c.bf16 %v761_v47, %v760_v46  ;;  %v754_v50 = vld [vmem:[%s379_s29] sm:$0xff]  ;;  %v665_v53 = vld [vmem:[#allocation7 + $0x78] sm:$0xff]  ;;  %v1287_v56 = vld [vmem:[#allocation9 + $0x2] ss:$0 sm:$0xff]  ;;  %s1766_s25 = smov 96  }
  0xac   : > { %1440 = vmatpush3.bf16.msra.mxu1 %v1439_v15  ;;  %v756_v51 = vsel %vm389_vm1, %v754_v50, 0.0  ;;  %v1451_v54 = vpack.c.bf16 %v665_v53, %v664_v52  ;;  %v755_v55 = vld [vmem:[%s326_s30] sm:$0xff]  ;;  %v845_v57 = vld [vmem:[#allocation7 + $0xa0] sm:$0xff]  ;;  %v846_v58 = vld [vmem:[#allocation7 + $0xa8] sm:$0xff] }
  0xad   : > { %1350 = vmatmul.mubr.msk.f32.vlgmr.msra.gmra.mrb[0].mxu0 %vm402_vm2, %v390_v12  ;;  %1447 = vmatprep.subr.bf16.mxu1 %v1761_v0  ;;  %v1460_v62 = vpack.c.bf16 %v846_v58, %v845_v57  ;;  %v847_v2 = vld [vmem:[#allocation7 + $0xb0] sm:$0xff]  ;;  %v848_v3 = vld [vmem:[#allocation7 + $0xb8] sm:$0xff]  ;;  %v1291_v4 = vld [vmem:[#allocation9 + $0x4] ss:$0 sm:$0xff] }
  0xae   : > { %1371 = vmatprep.mubr.msk.f32.mxu0 %vm1762_vm0, %v1763_v1  ;;  %1443 = vmatpush3.bf16.msra.mxu0 %v1442_v24  ;;  %v1463_v5 = vpack.c.bf16 %v848_v3, %v847_v2  ;;  %v941_v10 = vld [vmem:[#allocation7 + $0xc0] sm:$0xff]  ;;  %v942_v11 = vld [vmem:[#allocation7 + $0xc8] sm:$0xff]  ;;  %v943_v13 = vld [vmem:[#allocation7 + $0xd0] sm:$0xff] }
  0xaf   : > { %1444 = vmatprep.subr.bf16.mxu0 %v1761_v0  ;;  %931 = vrot.lane.b32.xlu0 %v755_v55, %s1764_s26  ;;  %v1466_v12 = vpack.c.bf16 %v942_v11, %v941_v10  ;;  %v944_v14 = vld [vmem:[#allocation7 + $0xd8] sm:$0xff]  ;;  %v1028_v16 = vld [vmem:[#allocation7 + $0xe0] sm:$0xff] }
  0xb0   : > { %v1469_v15 = vpack.c.bf16 %v944_v14, %v943_v13  ;;  %v1293_v23 = vld [vmem:[#allocation9 + $0x5] ss:$0 sm:$0xff]  ;;  %v1297_v42 = vld [vmem:[#allocation9 + $0x7] ss:$0 sm:$0xff] }
  0xb2   : > { %1446 = vmatpush3.bf16.msra.mxu0 %v1445_v27 }
  0xb3   : > { %1453 = vmatprep.subr.bf16.mxu0 %v1761_v0 }
 0x119   : > { %v565_v38 = vpop.permute.xlu0 %564 }
 0x11a   : > { %v568_v40 = vsel %vm567_vm3, 0.0, %v565_v38 }
 0x121   : > { %v932_v29 = vpop.permute.xlu0 %931 }
 0x180   : > { %v472_v18 = vpop.f32.mrb[0].mxu0 }
 0x181   : > { %v473_v19 = vadd.f32 %v1283_v17, %v472_v18  ;;  %v1351_v20 = vpop.f32.mrb[1].mxu0  ;;  %v1029_v17 = vld [vmem:[#allocation7 + $0xe8] sm:$0xff]  ;;  %v1289_v18 = vld [vmem:[#allocation9 + $0x3] ss:$0 sm:$0xff] }
 0x183   : > { %v476_v21 = vmax.f32 %v473_v19, 0.0  ;;  %v1472_v19 = vpack.c.bf16 %v1029_v17, %v1028_v16 }
 0x185   : > { %1361 = vmatmul.mubr.msk.f32.vlgmr.msra.gmra.mrb[0].mxu1 %vm402_vm2, %v476_v21 }
 0x186   : > { %1382 = vmatprep.mubr.msk.f32.mxu1 %vm1762_vm0, %v1763_v1  ;;  %1449 = vmatpush3.bf16.msra.mxu1 %v1448_v30  ;;  %v934_v30 = vsel %vm567_vm3, 0.0, %v932_v29 }
 0x187   : > { %1450 = vmatprep.subr.bf16.mxu1 %v1761_v0 }
 0x18a   : > { %1452 = vmatpush3.bf16.msra.mxu1 %v1451_v54 }
 0x18b   : > { %1459 = vmatprep.subr.bf16.mxu1 %v1761_v0 }
 0x258   : > { %v559_v32 = vpop.f32.mrb[0].mxu1 }
 0x259   : > { %v560_v33 = vadd.f32 %v1285_v31, %v559_v32  ;;  %v1362_v34 = vpop.f32.mrb[1].mxu1 }
 0x25a   : > { %v1031_v34 = vld [vmem:[#allocation7 + $0xf8] sm:$0xff] }
 0x25b   : > { %v569_v35 = vmul.f32 0.5, %v560_v33  ;;  %749 = vrot.lane.b32.xlu1 %v560_v33, %s1765_s16 }
 0x25d   : > { %v570_v36 = vmul.f32 1.442695, %v569_v35 }
 0x25f   : > { %1558 = vpow2.f32 %v570_v36  ;;  %v1295_v36 = vld [vmem:[#allocation9 + $0x6] ss:$0 sm:$0xff] }
 0x269   : > { %v1559_v43 = vpop.eup %1558 }
 0x26a   : > { %v572_v44 = vmul.f32 %v1559_v43, %v568_v40 }
 0x26c   : > { %v573_v48 = vsel %vm386_vm4, %v560_v33, %v572_v44  ;;  %v1030_v33 = vld [vmem:[#allocation7 + $0xf0] sm:$0xff] }
 0x26d   : > { %1372 = vmatmul.mubr.msk.f32.vlgmr.msra.gmra.mrb[2].mxu0 %vm402_vm2, %v573_v48  ;;  %v1475_v35 = vpack.c.bf16 %v1031_v34, %v1030_v33 }
 0x26e   : > { %1455 = vmatpush3.bf16.msra.mxu0 %v1454_v45  ;;  %1393 = vmatprep.mubr.msk.f32.mxu0 %vm1762_vm0, %v1763_v1 }
 0x26f   : > { %1456 = vmatprep.subr.bf16.mxu0 %v1761_v0 }
 0x272   : > { %1458 = vmatpush3.bf16.msra.mxu0 %v1457_v49 }
 0x273   : > { %1465 = vmatprep.subr.bf16.mxu0 %v1761_v0 }
 0x275   : > { %1394 = vmatmul.mubr.msk.f32.vlgmr.msra.gmra.mrb[4].mxu0 %vm402_vm2, %v756_v51 }
 0x276   : > { %1415 = vmatprep.mubr.msk.f32.mxu0 %vm1762_vm0, %v1763_v1  ;;  %1467 = vmatpush3.bf16.msra.mxu0 %v1466_v12 }
 0x277   : > { %1468 = vmatprep.subr.bf16.mxu0 %v1761_v0 }
 0x27a   : > { %1470 = vmatpush3.bf16.msra.mxu0 %v1469_v15 }
 0x2cd   : > { %v750_v22 = vpop.permute.xlu1 %749 }
 0x340   : > { %v656_v59 = vpop.f32.mrb[2].mxu0 }
 0x341   : > { %v657_v60 = vadd.f32 %v1287_v56, %v656_v59  ;;  %v1373_v61 = vpop.f32.mrb[3].mxu0 }
 0x343   : > { %v660_v63 = vmax.f32 %v657_v60, 0.0 }
 0x345   : > { %1383 = vmatmul.mubr.msk.f32.vlgmr.msra.gmra.mrb[2].mxu1 %vm402_vm2, %v660_v63 }
 0x346   : > { %1461 = vmatpush3.bf16.msra.mxu1 %v1460_v62  ;;  %1404 = vmatprep.mubr.msk.f32.mxu1 %vm1762_vm0, %v1763_v1 }
 0x347   : > { %1462 = vmatprep.subr.bf16.mxu1 %v1761_v0 }
 0x348   : > { %v839_v6 = vpop.f32.mrb[4].mxu0 }
 0x349   : > { %v840_v7 = vadd.f32 %v1291_v4, %v839_v6  ;;  %v1395_v8 = vpop.f32.mrb[5].mxu0 }
 0x34a   : > { %1464 = vmatpush3.bf16.msra.mxu1 %v1463_v5 }
 0x34b   : > { %v843_v9 = vmax.f32 %v840_v7, 0.0  ;;  %1471 = vmatprep.subr.bf16.mxu1 %v1761_v0 }
 0x34d   : > { %1405 = vmatmul.mubr.msk.f32.vlgmr.msra.gmra.mrb[4].mxu1 %vm402_vm2, %v843_v9 }
 0x34e   : > { %1426 = vmatprep.mubr.msk.f32.mxu1 %vm1762_vm0, %v1763_v1  ;;  %1473 = vmatpush3.bf16.msra.mxu1 %v1472_v19 }
 0x34f   : > { %1474 = vmatprep.subr.bf16.mxu1 %v1761_v0 }
 0x352   : > { %1476 = vmatpush3.bf16.msra.mxu1 %v1475_v35 }
 0x418   : > { %v743_v1 = vpop.f32.mrb[2].mxu1 }
 0x419   : > { %v744_v20 = vadd.f32 %v1289_v18, %v743_v1  ;;  %v1384_v21 = vpop.f32.mrb[3].mxu1 }
 0x41b   : > { %747 = vst.msk [vmem:[%s2100_s11] sm:$0xff] %vm402_vm2, %v744_v20 }
 0x41c   : > { %753 = vst.msk [vmem:[%s2100_s11] sm:$0xff] %vm752_vm5, %v750_v22 }
 0x420   : > { %v926_v24 = vpop.f32.mrb[4].mxu1 }
 0x421   : > { %v927_v25 = vadd.f32 %v1293_v23, %v926_v24  ;;  %v1406_v26 = vpop.f32.mrb[5].mxu1 }
 0x423   : > { %v935_v27 = vmul.f32 0.5, %v927_v25  ;;  %1120 = vrot.lane.b32.xlu0 %v927_v25, %s1766_s25 }
 0x425   : > { %v936_v28 = vmul.f32 1.442695, %v935_v27 }
 0x427   : > { %1560 = vpow2.f32 %v936_v28 }
 0x431   : > { %v1561_v31 = vpop.eup %1560 }
 0x432   : > { %v938_v32 = vmul.f32 %v1561_v31, %v934_v30 }
 0x434   : > { %v939_v0 = vsel %vm386_vm4, %v927_v25, %v938_v32 }
 0x435   : > { %1416 = vmatmul.mubr.msk.f32.vlgmr.msra.gmra.mrb[6].mxu0 %vm402_vm2, %v939_v0 }
 0x495   : > { %v1121_v46 = vpop.permute.xlu0 %1120 }
 0x508   : > { %v1022_v37 = vpop.f32.mrb[6].mxu0 }
 0x509   : > { %v1023_v38 = vadd.f32 %v1295_v36, %v1022_v37  ;;  %v1417_v40 = vpop.f32.mrb[7].mxu0 }
 0x50b   : > { %v1026_v41 = vmax.f32 %v1023_v38, 0.0 }
 0x50d   : > { %1427 = vmatmul.mubr.msk.f32.vlgmr.msra.gmra.mrb[6].mxu1 %vm402_vm2, %v1026_v41 }
 0x5e0   : > { %v1109_v43 = vpop.f32.mrb[6].mxu1 }
 0x5e1   : > { %v1110_v44 = vadd.f32 %v1297_v42, %v1109_v43  ;;  %v1428_v39 = vpop.f32.mrb[7].mxu1 }
 0x5e3   : > { %1114 = vrot.lane.b32.xlu1 %v1110_v44, %s1767_s21 }
 0x655   : > { %v1115_v45 = vpop.permute.xlu1 %1114 }
 0x656   : > { %1118 = vst.msk [vmem:[%s2100_s11] sm:$0xff] %vm1117_vm6, %v1115_v45 }
 0x657   : > { %1124 = vst.msk [vmem:[%s2100_s11] sm:$0xff] %vm1123_vm7, %v1121_v46 }
 0x658 PF: > { %p20_p6 = scmp.ge.s32.totalorder %s1847_s7, 4   ;;  %s2162_s21 = smov %s1742_s22 }
 0x659   : > { %s2163_s22 = smov %s1746_s23  ;;  %s2164_s23 = smov %s1879_s28 }
 0x65a   : > { %s2165_s24 = smov %s1847_s7  ;;  %22 = sbr.rel (!%p20_p6) target bundleno = 8 (0x8), region = 133 }
 0x661   :  { %1144 = vsyncpa [#allocation3], 1 }
 0x662   :  { %1146 = vsyncpa [#allocation3 + $0x1], 1 }
 0x663   :  { %1147 = vsyncpa [#allocation5], 1 }
 0x664   :  { %1149 = vsyncpa [#allocation5 + $0x1], 1 }
 0x665   :  { %1150 = vsyncpa [#allocation8], 1 }

</bundles_post_ra>
